<compile_context>
chip_gen: v6e
topology: v6e:2x2x1
jax: 0.10.0
libtpu: 0.0.40
codegen_flags: <defaults>
</compile_context>

<pallas_src>
import math

import jax
import jax.numpy as jnp
from jax.experimental import pallas as pl
from jax.experimental.pallas import tpu as pltpu

# Small, self-consistent config (ModelArgs analog): dim % n_head == 0,
# head_dim = 64 as in the real module (dim=768, n_head=12).
DIM = 128
N_HEAD = 2
HEAD_DIM = DIM // N_HEAD   # 64
BATCH = 2
TGT_LEN = 8                # target_seq_len (x)
SRC_LEN = 16               # source_seq_len (xa)

# Grid size.  1 => whole batch fused into a single grid step (best on
# single-TC v5e/v6e: saves ~0.35 us/step pipeline overhead).  On v7x set >= 2
# (and use pltpu.CORE_PARALLEL below) so both TensorCores get work.
NUM_PARALLEL_GROUPS = 1

# Enable at production D: weights have a constant index_map, so
# multi-buffering buys nothing and single-buffering halves their VMEM
# footprint (critical on v7x's 64 MiB/TC).  Irrelevant at D = 128.
SINGLE_BUFFER_WEIGHTS = False


def cross_attention_kernel(x_ref, xa_ref,
                           wq_ref, bq_ref,
                           wkv_ref, bkv_ref,
                           wo3_ref, bo_ref,
                           o_ref):
    bg, t, d = x_ref.shape              # (batch-group, target_len, dim)
    s_len = xa_ref.shape[1]
    n_head, head_dim, _ = wo3_ref.shape

    # ---- Fused projections over the whole batch group, bf16 MXU inputs with
    # f32 accumulation.  The 1/sqrt(head_dim) scale is already folded into
    # wq/bq host-side.  K and V share ONE (D, 2D) matmul.
    x = x_ref[...].reshape(bg * t, d).astype(jnp.bfloat16)
    xa = xa_ref[...].reshape(bg * s_len, d).astype(jnp.bfloat16)

    q = jnp.dot(x, wq_ref[...], preferred_element_type=jnp.float32) + bq_ref[...]
    kv = jnp.dot(xa, wkv_ref[...], preferred_element_type=jnp.float32) + bkv_ref[...]

    # ONE bf16 cast each, before any head handling (feedback: not per-slice).
    q = q.astype(jnp.bfloat16)
    kv = kv.astype(jnp.bfloat16)
    k = kv[:, :d]          # 128-lane-aligned slice when D is a multiple of 128
    v = kv[:, d:]

    for b in range(bg):                       # static; bg == B when 1 group
        q_g = q[b * t:(b + 1) * t]            # (T, D)
        k_g = k[b * s_len:(b + 1) * s_len]    # (S, D)
        v_g = v[b * s_len:(b + 1) * s_len]    # (S, D)

        # Out-projection is folded per head: sum_h ctx_h @ wo3[h]
        # (== concat-heads @ wo, but with no concatenate / relayout).
        acc = jnp.zeros((t, d), jnp.float32)

        for h in range(n_head):               # static; H small matmuls ==
            lo = h * head_dim                 # what the batched einsum lowers
            hi = lo + head_dim                # to anyway at this head_dim.
            q_h = q_g[:, lo:hi]               # (T, hd)  static lane slices
            k_h = k_g[:, lo:hi]               # (S, hd)
            v_h = v_g[:, lo:hi]               # (S, hd)

            # Scores: (T, hd) @ (hd, S) on the MXU, f32 accumulation.
            s = jnp.dot(q_h, k_h.T, preferred_element_type=jnp.float32)

            # Softmax entirely in f32 (v5e-safe); EUP reciprocal, no divide.
            s = s - jnp.max(s, axis=-1, keepdims=True)
            p = jnp.exp(s)
            p = p * pl.reciprocal(jnp.sum(p, axis=-1, keepdims=True),
                                  approx=True)

            # PV and the folded out-projection contribution for this head.
            ctx_h = jnp.dot(p.astype(jnp.bfloat16), v_h,
                            preferred_element_type=jnp.float32)      # (T, hd)
            acc = acc + jnp.dot(ctx_h.astype(jnp.bfloat16), wo3_ref[h],
                                preferred_element_type=jnp.float32)  # (T, D)

        # Lane-dense (D = multiple of 128) unmasked store.
        o_ref[b] = (acc + bo_ref[...]).astype(o_ref.dtype)


def prepare_params(params, compute_dtype=jnp.bfloat16):
    """One-time host-side parameter transform:
       * fold 1/sqrt(head_dim) into the query projection,
       * fuse wk|wv -> (D, 2D) and bk|bv -> (1, 2D),
       * reshape wo -> (N_HEAD, HEAD_DIM, D) so the out-projection can be
         accumulated per head without concatenating heads,
       * cast weights to the MXU input dtype (biases stay f32)."""
    wq, bq, wk, bk, wv, bv, wo, bo = params
    scale = 1.0 / math.sqrt(HEAD_DIM)
    wkv = jnp.concatenate([wk, wv], axis=1)
    bkv = jnp.concatenate([bk, bv], axis=1)
    wo3 = wo.reshape(N_HEAD, HEAD_DIM, wo.shape[1])
    return ((wq * scale).astype(compute_dtype),
            (bq * scale).astype(jnp.float32),
            wkv.astype(compute_dtype),
            bkv.astype(jnp.float32),
            wo3.astype(compute_dtype),
            bo.astype(jnp.float32))


def cross_attention(x, xa, prepared_params, *, num_groups=None):
    """x: (B, T, D), xa: (B, S, D). Returns (B, T, D)."""
    B, T, D = x.shape
    _, S, _ = xa.shape
    if num_groups is None:
        num_groups = max(1, math.gcd(B, NUM_PARALLEL_GROUPS))
    assert B % num_groups == 0
    Bg = B // num_groups

    wq, bq, wkv, bkv, wo3, bo = prepared_params

    def seq_spec(n):
        return pl.BlockSpec((Bg, n, D), lambda g: (g, 0, 0))

    # Constant-index weight specs; optionally single-buffered at production D
    # (see SINGLE_BUFFER_WEIGHTS) so the footprint fits v7x's 64 MiB/TC VMEM.
    wkwargs = dict(pipeline_mode=pl.Buffered(1)) if SINGLE_BUFFER_WEIGHTS else {}

    def w_spec(shape):
        zeros = (0,) * len(shape)
        return pl.BlockSpec(shape, lambda g: zeros, **wkwargs)

    return pl.pallas_call(
        cross_attention_kernel,
        out_shape=jax.ShapeDtypeStruct((B, T, D), x.dtype),
        grid_spec=pltpu.PrefetchScalarGridSpec(
            num_scalar_prefetch=0,
            grid=(num_groups,),
            in_specs=[
                seq_spec(T),                      # x
                seq_spec(S),                      # xa
                w_spec((D, D)),                   # wq (scale pre-folded)
                w_spec((1, D)),                   # bq (scale pre-folded)
                w_spec((D, 2 * D)),               # wk|wv fused
                w_spec((1, 2 * D)),               # bk|bv fused
                w_spec((N_HEAD, HEAD_DIM, D)),    # wo reshaped (H, hd, D)
                w_spec((1, D)),                   # bo
            ],
            out_specs=seq_spec(T),
        ),
        compiler_params=pltpu.CompilerParams(
            # On v7x: use (pltpu.CORE_PARALLEL,) with NUM_PARALLEL_GROUPS >= 2
            # to shard the grid across both TensorCores.
            dimension_semantics=("parallel",),
            # Explicit budget (defaults: 16 MiB v5e / 32 MiB v6e,v7x scoped).
            vmem_limit_bytes=64 * 1024 * 1024,
        ),
    )(x, xa, wq, bq, wkv, bkv, wo3, bo)


def make_params(key, dim):
    """Deterministic synthetic parameters for the four Linear layers (f32,
    layout: W is (D_in, D_out) == nn.Linear weight transposed, b is (1, D))."""
    keys = jax.random.split(key, 8)
    scale = 1.0 / math.sqrt(dim)
    def lin(kw, kb):
        w = jax.random.normal(kw, (dim, dim), jnp.float32) * scale
        b = jax.random.normal(kb, (1, dim), jnp.float32) * 0.02
        return w, b
    wq, bq = lin(keys[0], keys[1])
    wk, bk = lin(keys[2], keys[3])
    wv, bv = lin(keys[4], keys[5])
    wo, bo = lin(keys[6], keys[7])
    return (wq, bq, wk, bk, wv, bv, wo, bo)


def cross_attention_ref(x, xa, params):
    """Pure-JAX f32 reference mirroring the PyTorch forward."""
    wq, bq, wk, bk, wv, bv, wo, bo = params
    B, T, D = x.shape
    S = xa.shape[1]
    q = x @ wq + bq
    k = xa @ wk + bk
    v = xa @ wv + bv
    q = q.reshape(B, T, N_HEAD, HEAD_DIM).transpose(0, 2, 1, 3)
    k = k.reshape(B, S, N_HEAD, HEAD_DIM).transpose(0, 2, 1, 3)
    v = v.reshape(B, S, N_HEAD, HEAD_DIM).transpose(0, 2, 1, 3)
    s = jnp.einsum("bhtd,bhsd->bhts", q, k) / math.sqrt(HEAD_DIM)
    p = jax.nn.softmax(s, axis=-1)
    wv_ = jnp.einsum("bhts,bhsd->bhtd", p, v)
    wv_ = wv_.transpose(0, 2, 1, 3).reshape(B, T, D)
    return wv_ @ wo + bo


if __name__ == "__main__":
    key = jax.random.PRNGKey(0)
    kx, kxa, kp = jax.random.split(key, 3)
    x = jax.random.normal(kx, (BATCH, TGT_LEN, DIM), jnp.float32)
    xa = jax.random.normal(kxa, (BATCH, SRC_LEN, DIM), jnp.float32)
    params = make_params(kp, DIM)
    prepared = prepare_params(params)

    out = cross_attention(x, xa, prepared)
    out = jax.block_until_ready(out)

    ref = cross_attention_ref(x, xa, params)
    assert out.shape == (BATCH, TGT_LEN, DIM)
    # bf16 MXU inputs + approx reciprocal -> looser tolerance than pure f32.
    assert jnp.allclose(out, ref, atol=5e-2, rtol=5e-2), "mismatch vs reference"

    print("KERNEL_OK")
</pallas_src>

<mosaic_0001>
module attributes {stable_mosaic.version = 11 : i64} {
  func.func @cross_attention_kernel(%arg0: i32, %arg1: memref<2x8x128xf32, #tpu.memory_space<vmem>>, %arg2: memref<2x16x128xf32, #tpu.memory_space<vmem>>, %arg3: memref<128x128xbf16, #tpu.memory_space<vmem>>, %arg4: memref<1x128xf32, #tpu.memory_space<vmem>>, %arg5: memref<128x256xbf16, #tpu.memory_space<vmem>>, %arg6: memref<1x256xf32, #tpu.memory_space<vmem>>, %arg7: memref<2x64x128xbf16, #tpu.memory_space<vmem>>, %arg8: memref<1x128xf32, #tpu.memory_space<vmem>>, %arg9: memref<2x8x128xf32, #tpu.memory_space<vmem>>) attributes {dimension_semantics = [#tpu.dimension_semantics<parallel>], iteration_bounds = array<i64: 1>, scalar_prefetch = 0 : i64, scratch_operands = 0 : i64, tpu.core_type = #tpu.core_type<tc>, window_params = [{transform_indices = @transform_0, window_bounds = array<i64: 2, 8, 128>}, {transform_indices = @transform_1, window_bounds = array<i64: 2, 16, 128>}, {pipeline_mode = #tpu.pipeline_mode<synchronous>, transform_indices = @transform_2, window_bounds = array<i64: 128, 128>}, {pipeline_mode = #tpu.pipeline_mode<synchronous>, transform_indices = @transform_3, window_bounds = array<i64: 1, 128>}, {pipeline_mode = #tpu.pipeline_mode<synchronous>, transform_indices = @transform_4, window_bounds = array<i64: 128, 256>}, {pipeline_mode = #tpu.pipeline_mode<synchronous>, transform_indices = @transform_5, window_bounds = array<i64: 1, 256>}, {pipeline_mode = #tpu.pipeline_mode<synchronous>, transform_indices = @transform_6, window_bounds = array<i64: 2, 64, 128>}, {pipeline_mode = #tpu.pipeline_mode<synchronous>, transform_indices = @transform_7, window_bounds = array<i64: 1, 128>}, {transform_indices = @transform_8, window_bounds = array<i64: 2, 8, 128>}]} {
    %c0 = arith.constant 0 : index
    %c0_0 = arith.constant 0 : index
    %c0_1 = arith.constant 0 : index
    %0 = vector.load %arg1[%c0, %c0_0, %c0_1] : memref<2x8x128xf32, #tpu.memory_space<vmem>>, vector<2x8x128xf32>
    %1 = vector.shape_cast %0 : vector<2x8x128xf32> to vector<16x128xf32>
    %2 = arith.truncf %1 : vector<16x128xf32> to vector<16x128xbf16>
    %c0_2 = arith.constant 0 : index
    %c0_3 = arith.constant 0 : index
    %c0_4 = arith.constant 0 : index
    %3 = vector.load %arg2[%c0_2, %c0_3, %c0_4] : memref<2x16x128xf32, #tpu.memory_space<vmem>>, vector<2x16x128xf32>
    %4 = vector.shape_cast %3 : vector<2x16x128xf32> to vector<32x128xf32>
    %5 = arith.truncf %4 : vector<32x128xf32> to vector<32x128xbf16>
    %c0_5 = arith.constant 0 : index
    %c0_6 = arith.constant 0 : index
    %6 = vector.load %arg3[%c0_5, %c0_6] : memref<128x128xbf16, #tpu.memory_space<vmem>>, vector<128x128xbf16>
    %cst = arith.constant dense<0.000000e+00> : vector<16x128xf32>
    %7 = tpu.matmul %2, %6, %cst {dimension_numbers = #tpu.dot_dimension_numbers<[1], [0], [0], [1], [0, 0, 1, 1], [], []>} : vector<16x128xbf16>, vector<128x128xbf16>, vector<16x128xf32> -> vector<16x128xf32>
    %c0_7 = arith.constant 0 : index
    %c0_8 = arith.constant 0 : index
    %8 = vector.load %arg4[%c0_7, %c0_8] : memref<1x128xf32, #tpu.memory_space<vmem>>, vector<1x128xf32>
    %9 = vector.broadcast %8 : vector<1x128xf32> to vector<16x128xf32>
    %10 = arith.addf %7, %9 : vector<16x128xf32>
    %c0_9 = arith.constant 0 : index
    %c0_10 = arith.constant 0 : index
    %11 = vector.load %arg5[%c0_9, %c0_10] : memref<128x256xbf16, #tpu.memory_space<vmem>>, vector<128x256xbf16>
    %cst_11 = arith.constant dense<0.000000e+00> : vector<32x256xf32>
    %12 = tpu.matmul %5, %11, %cst_11 {dimension_numbers = #tpu.dot_dimension_numbers<[1], [0], [0], [1], [0, 0, 1, 1], [], []>} : vector<32x128xbf16>, vector<128x256xbf16>, vector<32x256xf32> -> vector<32x256xf32>
    %c0_12 = arith.constant 0 : index
    %c0_13 = arith.constant 0 : index
    %13 = vector.load %arg6[%c0_12, %c0_13] : memref<1x256xf32, #tpu.memory_space<vmem>>, vector<1x256xf32>
    %14 = vector.broadcast %13 : vector<1x256xf32> to vector<32x256xf32>
    %15 = arith.addf %12, %14 : vector<32x256xf32>
    %16 = arith.truncf %10 : vector<16x128xf32> to vector<16x128xbf16>
    %17 = arith.truncf %15 : vector<32x256xf32> to vector<32x256xbf16>
    %18 = vector.extract_strided_slice %17 {offsets = [0, 0], sizes = [32, 128], strides = [1, 1]} : vector<32x256xbf16> to vector<32x128xbf16>
    %19 = vector.extract_strided_slice %17 {offsets = [0, 128], sizes = [32, 128], strides = [1, 1]} : vector<32x256xbf16> to vector<32x128xbf16>
    %20 = vector.extract_strided_slice %16 {offsets = [0, 0], sizes = [8, 128], strides = [1, 1]} : vector<16x128xbf16> to vector<8x128xbf16>
    %21 = vector.extract_strided_slice %18 {offsets = [0, 0], sizes = [16, 128], strides = [1, 1]} : vector<32x128xbf16> to vector<16x128xbf16>
    %22 = vector.extract_strided_slice %19 {offsets = [0, 0], sizes = [16, 128], strides = [1, 1]} : vector<32x128xbf16> to vector<16x128xbf16>
    %cst_14 = arith.constant 0.000000e+00 : f32
    %23 = vector.broadcast %cst_14 : f32 to vector<8x128xf32>
    %24 = vector.extract_strided_slice %20 {offsets = [0, 0], sizes = [8, 64], strides = [1, 1]} : vector<8x128xbf16> to vector<8x64xbf16>
    %25 = vector.extract_strided_slice %21 {offsets = [0, 0], sizes = [16, 64], strides = [1, 1]} : vector<16x128xbf16> to vector<16x64xbf16>
    %26 = vector.extract_strided_slice %22 {offsets = [0, 0], sizes = [16, 64], strides = [1, 1]} : vector<16x128xbf16> to vector<16x64xbf16>
    %27 = tpu.transpose %25, [1, 0] : vector<16x64xbf16> -> vector<64x16xbf16>
    %cst_15 = arith.constant dense<0.000000e+00> : vector<8x16xf32>
    %28 = tpu.matmul %24, %27, %cst_15 {dimension_numbers = #tpu.dot_dimension_numbers<[1], [0], [0], [1], [0, 0, 1, 1], [], []>} : vector<8x64xbf16>, vector<64x16xbf16>, vector<8x16xf32> -> vector<8x16xf32>
    %cst_16 = arith.constant dense<0xFF800000> : vector<8xf32>
    %29 = vector.multi_reduction <maximumf>, %28, %cst_16 [1] : vector<8x16xf32> to vector<8xf32>
    %30 = vector.shape_cast %29 : vector<8xf32> to vector<8x1xf32>
    %31 = vector.broadcast %30 : vector<8x1xf32> to vector<8x16xf32>
    %32 = arith.subf %28, %31 : vector<8x16xf32>
    %33 = math.exp %32 : vector<8x16xf32>
    %cst_17 = arith.constant dense<0.000000e+00> : vector<8xf32>
    %34 = vector.multi_reduction <add>, %33, %cst_17 [1] : vector<8x16xf32> to vector<8xf32>
    %35 = vector.shape_cast %34 : vector<8xf32> to vector<8x1xf32>
    %36 = tpu.reciprocal %35 {approx = true} : vector<8x1xf32> -> vector<8x1xf32>
    %37 = vector.broadcast %36 : vector<8x1xf32> to vector<8x16xf32>
    %38 = arith.mulf %33, %37 : vector<8x16xf32>
    %39 = arith.truncf %38 : vector<8x16xf32> to vector<8x16xbf16>
    %cst_18 = arith.constant dense<0.000000e+00> : vector<8x64xf32>
    %40 = tpu.matmul %39, %26, %cst_18 {dimension_numbers = #tpu.dot_dimension_numbers<[1], [0], [0], [1], [0, 0, 1, 1], [], []>} : vector<8x16xbf16>, vector<16x64xbf16>, vector<8x64xf32> -> vector<8x64xf32>
    %41 = arith.truncf %40 : vector<8x64xf32> to vector<8x64xbf16>
    %c0_19 = arith.constant 0 : index
    %c0_20 = arith.constant 0 : index
    %c0_21 = arith.constant 0 : index
    %42 = vector.load %arg7[%c0_19, %c0_20, %c0_21] : memref<2x64x128xbf16, #tpu.memory_space<vmem>>, vector<1x64x128xbf16>
    %43 = vector.shape_cast %42 : vector<1x64x128xbf16> to vector<64x128xbf16>
    %cst_22 = arith.constant dense<0.000000e+00> : vector<8x128xf32>
    %44 = tpu.matmul %41, %43, %cst_22 {dimension_numbers = #tpu.dot_dimension_numbers<[1], [0], [0], [1], [0, 0, 1, 1], [], []>} : vector<8x64xbf16>, vector<64x128xbf16>, vector<8x128xf32> -> vector<8x128xf32>
    %45 = arith.addf %23, %44 : vector<8x128xf32>
    %46 = vector.extract_strided_slice %20 {offsets = [0, 64], sizes = [8, 64], strides = [1, 1]} : vector<8x128xbf16> to vector<8x64xbf16>
    %47 = vector.extract_strided_slice %21 {offsets = [0, 64], sizes = [16, 64], strides = [1, 1]} : vector<16x128xbf16> to vector<16x64xbf16>
    %48 = vector.extract_strided_slice %22 {offsets = [0, 64], sizes = [16, 64], strides = [1, 1]} : vector<16x128xbf16> to vector<16x64xbf16>
    %49 = tpu.transpose %47, [1, 0] : vector<16x64xbf16> -> vector<64x16xbf16>
    %cst_23 = arith.constant dense<0.000000e+00> : vector<8x16xf32>
    %50 = tpu.matmul %46, %49, %cst_23 {dimension_numbers = #tpu.dot_dimension_numbers<[1], [0], [0], [1], [0, 0, 1, 1], [], []>} : vector<8x64xbf16>, vector<64x16xbf16>, vector<8x16xf32> -> vector<8x16xf32>
    %cst_24 = arith.constant dense<0xFF800000> : vector<8xf32>
    %51 = vector.multi_reduction <maximumf>, %50, %cst_24 [1] : vector<8x16xf32> to vector<8xf32>
    %52 = vector.shape_cast %51 : vector<8xf32> to vector<8x1xf32>
    %53 = vector.broadcast %52 : vector<8x1xf32> to vector<8x16xf32>
    %54 = arith.subf %50, %53 : vector<8x16xf32>
    %55 = math.exp %54 : vector<8x16xf32>
    %cst_25 = arith.constant dense<0.000000e+00> : vector<8xf32>
    %56 = vector.multi_reduction <add>, %55, %cst_25 [1] : vector<8x16xf32> to vector<8xf32>
    %57 = vector.shape_cast %56 : vector<8xf32> to vector<8x1xf32>
    %58 = tpu.reciprocal %57 {approx = true} : vector<8x1xf32> -> vector<8x1xf32>
    %59 = vector.broadcast %58 : vector<8x1xf32> to vector<8x16xf32>
    %60 = arith.mulf %55, %59 : vector<8x16xf32>
    %61 = arith.truncf %60 : vector<8x16xf32> to vector<8x16xbf16>
    %cst_26 = arith.constant dense<0.000000e+00> : vector<8x64xf32>
    %62 = tpu.matmul %61, %48, %cst_26 {dimension_numbers = #tpu.dot_dimension_numbers<[1], [0], [0], [1], [0, 0, 1, 1], [], []>} : vector<8x16xbf16>, vector<16x64xbf16>, vector<8x64xf32> -> vector<8x64xf32>
    %63 = arith.truncf %62 : vector<8x64xf32> to vector<8x64xbf16>
    %c1 = arith.constant 1 : index
    %c0_27 = arith.constant 0 : index
    %c0_28 = arith.constant 0 : index
    %64 = vector.load %arg7[%c1, %c0_27, %c0_28] : memref<2x64x128xbf16, #tpu.memory_space<vmem>>, vector<1x64x128xbf16>
    %65 = vector.shape_cast %64 : vector<1x64x128xbf16> to vector<64x128xbf16>
    %cst_29 = arith.constant dense<0.000000e+00> : vector<8x128xf32>
    %66 = tpu.matmul %63, %65, %cst_29 {dimension_numbers = #tpu.dot_dimension_numbers<[1], [0], [0], [1], [0, 0, 1, 1], [], []>} : vector<8x64xbf16>, vector<64x128xbf16>, vector<8x128xf32> -> vector<8x128xf32>
    %67 = arith.addf %45, %66 : vector<8x128xf32>
    %c0_30 = arith.constant 0 : index
    %c0_31 = arith.constant 0 : index
    %68 = vector.load %arg8[%c0_30, %c0_31] : memref<1x128xf32, #tpu.memory_space<vmem>>, vector<1x128xf32>
    %69 = vector.broadcast %68 : vector<1x128xf32> to vector<8x128xf32>
    %70 = arith.addf %67, %69 : vector<8x128xf32>
    %c0_32 = arith.constant 0 : index
    %c0_33 = arith.constant 0 : index
    %c0_34 = arith.constant 0 : index
    %71 = vector.load %arg9[%c0_32, %c0_33, %c0_34] : memref<2x8x128xf32, #tpu.memory_space<vmem>>, vector<1x8x128xf32>
    %72 = vector.shape_cast %71 : vector<1x8x128xf32> to vector<8x128xf32>
    %73 = vector.shape_cast %70 : vector<8x128xf32> to vector<1x8x128xf32>
    tpu.vector_store %arg9[%c0_32, %c0_33, %c0_34], %73 {strides = array<i32>} : memref<2x8x128xf32, #tpu.memory_space<vmem>>, vector<1x8x128xf32>,
    %74 = vector.extract_strided_slice %16 {offsets = [8, 0], sizes = [8, 128], strides = [1, 1]} : vector<16x128xbf16> to vector<8x128xbf16>
    %75 = vector.extract_strided_slice %18 {offsets = [16, 0], sizes = [16, 128], strides = [1, 1]} : vector<32x128xbf16> to vector<16x128xbf16>
    %76 = vector.extract_strided_slice %19 {offsets = [16, 0], sizes = [16, 128], strides = [1, 1]} : vector<32x128xbf16> to vector<16x128xbf16>
    %cst_35 = arith.constant 0.000000e+00 : f32
    %77 = vector.broadcast %cst_35 : f32 to vector<8x128xf32>
    %78 = vector.extract_strided_slice %74 {offsets = [0, 0], sizes = [8, 64], strides = [1, 1]} : vector<8x128xbf16> to vector<8x64xbf16>
    %79 = vector.extract_strided_slice %75 {offsets = [0, 0], sizes = [16, 64], strides = [1, 1]} : vector<16x128xbf16> to vector<16x64xbf16>
    %80 = vector.extract_strided_slice %76 {offsets = [0, 0], sizes = [16, 64], strides = [1, 1]} : vector<16x128xbf16> to vector<16x64xbf16>
    %81 = tpu.transpose %79, [1, 0] : vector<16x64xbf16> -> vector<64x16xbf16>
    %cst_36 = arith.constant dense<0.000000e+00> : vector<8x16xf32>
    %82 = tpu.matmul %78, %81, %cst_36 {dimension_numbers = #tpu.dot_dimension_numbers<[1], [0], [0], [1], [0, 0, 1, 1], [], []>} : vector<8x64xbf16>, vector<64x16xbf16>, vector<8x16xf32> -> vector<8x16xf32>
    %cst_37 = arith.constant dense<0xFF800000> : vector<8xf32>
    %83 = vector.multi_reduction <maximumf>, %82, %cst_37 [1] : vector<8x16xf32> to vector<8xf32>
    %84 = vector.shape_cast %83 : vector<8xf32> to vector<8x1xf32>
    %85 = vector.broadcast %84 : vector<8x1xf32> to vector<8x16xf32>
    %86 = arith.subf %82, %85 : vector<8x16xf32>
    %87 = math.exp %86 : vector<8x16xf32>
    %cst_38 = arith.constant dense<0.000000e+00> : vector<8xf32>
    %88 = vector.multi_reduction <add>, %87, %cst_38 [1] : vector<8x16xf32> to vector<8xf32>
    %89 = vector.shape_cast %88 : vector<8xf32> to vector<8x1xf32>
    %90 = tpu.reciprocal %89 {approx = true} : vector<8x1xf32> -> vector<8x1xf32>
    %91 = vector.broadcast %90 : vector<8x1xf32> to vector<8x16xf32>
    %92 = arith.mulf %87, %91 : vector<8x16xf32>
    %93 = arith.truncf %92 : vector<8x16xf32> to vector<8x16xbf16>
    %cst_39 = arith.constant dense<0.000000e+00> : vector<8x64xf32>
    %94 = tpu.matmul %93, %80, %cst_39 {dimension_numbers = #tpu.dot_dimension_numbers<[1], [0], [0], [1], [0, 0, 1, 1], [], []>} : vector<8x16xbf16>, vector<16x64xbf16>, vector<8x64xf32> -> vector<8x64xf32>
    %95 = arith.truncf %94 : vector<8x64xf32> to vector<8x64xbf16>
    %c0_40 = arith.constant 0 : index
    %c0_41 = arith.constant 0 : index
    %c0_42 = arith.constant 0 : index
    %96 = vector.load %arg7[%c0_40, %c0_41, %c0_42] : memref<2x64x128xbf16, #tpu.memory_space<vmem>>, vector<1x64x128xbf16>
    %97 = vector.shape_cast %96 : vector<1x64x128xbf16> to vector<64x128xbf16>
    %cst_43 = arith.constant dense<0.000000e+00> : vector<8x128xf32>
    %98 = tpu.matmul %95, %97, %cst_43 {dimension_numbers = #tpu.dot_dimension_numbers<[1], [0], [0], [1], [0, 0, 1, 1], [], []>} : vector<8x64xbf16>, vector<64x128xbf16>, vector<8x128xf32> -> vector<8x128xf32>
    %99 = arith.addf %77, %98 : vector<8x128xf32>
    %100 = vector.extract_strided_slice %74 {offsets = [0, 64], sizes = [8, 64], strides = [1, 1]} : vector<8x128xbf16> to vector<8x64xbf16>
    %101 = vector.extract_strided_slice %75 {offsets = [0, 64], sizes = [16, 64], strides = [1, 1]} : vector<16x128xbf16> to vector<16x64xbf16>
    %102 = vector.extract_strided_slice %76 {offsets = [0, 64], sizes = [16, 64], strides = [1, 1]} : vector<16x128xbf16> to vector<16x64xbf16>
    %103 = tpu.transpose %101, [1, 0] : vector<16x64xbf16> -> vector<64x16xbf16>
    %cst_44 = arith.constant dense<0.000000e+00> : vector<8x16xf32>
    %104 = tpu.matmul %100, %103, %cst_44 {dimension_numbers = #tpu.dot_dimension_numbers<[1], [0], [0], [1], [0, 0, 1, 1], [], []>} : vector<8x64xbf16>, vector<64x16xbf16>, vector<8x16xf32> -> vector<8x16xf32>
    %cst_45 = arith.constant dense<0xFF800000> : vector<8xf32>
    %105 = vector.multi_reduction <maximumf>, %104, %cst_45 [1] : vector<8x16xf32> to vector<8xf32>
    %106 = vector.shape_cast %105 : vector<8xf32> to vector<8x1xf32>
    %107 = vector.broadcast %106 : vector<8x1xf32> to vector<8x16xf32>
    %108 = arith.subf %104, %107 : vector<8x16xf32>
    %109 = math.exp %108 : vector<8x16xf32>
    %cst_46 = arith.constant dense<0.000000e+00> : vector<8xf32>
    %110 = vector.multi_reduction <add>, %109, %cst_46 [1] : vector<8x16xf32> to vector<8xf32>
    %111 = vector.shape_cast %110 : vector<8xf32> to vector<8x1xf32>
    %112 = tpu.reciprocal %111 {approx = true} : vector<8x1xf32> -> vector<8x1xf32>
    %113 = vector.broadcast %112 : vector<8x1xf32> to vector<8x16xf32>
    %114 = arith.mulf %109, %113 : vector<8x16xf32>
    %115 = arith.truncf %114 : vector<8x16xf32> to vector<8x16xbf16>
    %cst_47 = arith.constant dense<0.000000e+00> : vector<8x64xf32>
    %116 = tpu.matmul %115, %102, %cst_47 {dimension_numbers = #tpu.dot_dimension_numbers<[1], [0], [0], [1], [0, 0, 1, 1], [], []>} : vector<8x16xbf16>, vector<16x64xbf16>, vector<8x64xf32> -> vector<8x64xf32>
    %117 = arith.truncf %116 : vector<8x64xf32> to vector<8x64xbf16>
    %c1_48 = arith.constant 1 : index
    %c0_49 = arith.constant 0 : index
    %c0_50 = arith.constant 0 : index
    %118 = vector.load %arg7[%c1_48, %c0_49, %c0_50] : memref<2x64x128xbf16, #tpu.memory_space<vmem>>, vector<1x64x128xbf16>
    %119 = vector.shape_cast %118 : vector<1x64x128xbf16> to vector<64x128xbf16>
    %cst_51 = arith.constant dense<0.000000e+00> : vector<8x128xf32>
    %120 = tpu.matmul %117, %119, %cst_51 {dimension_numbers = #tpu.dot_dimension_numbers<[1], [0], [0], [1], [0, 0, 1, 1], [], []>} : vector<8x64xbf16>, vector<64x128xbf16>, vector<8x128xf32> -> vector<8x128xf32>
    %121 = arith.addf %99, %120 : vector<8x128xf32>
    %c0_52 = arith.constant 0 : index
    %c0_53 = arith.constant 0 : index
    %122 = vector.load %arg8[%c0_52, %c0_53] : memref<1x128xf32, #tpu.memory_space<vmem>>, vector<1x128xf32>
    %123 = vector.broadcast %122 : vector<1x128xf32> to vector<8x128xf32>
    %124 = arith.addf %121, %123 : vector<8x128xf32>
    %c1_54 = arith.constant 1 : index
    %c0_55 = arith.constant 0 : index
    %c0_56 = arith.constant 0 : index
    %125 = vector.load %arg9[%c1_54, %c0_55, %c0_56] : memref<2x8x128xf32, #tpu.memory_space<vmem>>, vector<1x8x128xf32>
    %126 = vector.shape_cast %125 : vector<1x8x128xf32> to vector<8x128xf32>
    %127 = vector.shape_cast %124 : vector<8x128xf32> to vector<1x8x128xf32>
    tpu.vector_store %arg9[%c1_54, %c0_55, %c0_56], %127 {strides = array<i32>} : memref<2x8x128xf32, #tpu.memory_space<vmem>>, vector<1x8x128xf32>,
    return
  }
  func.func @transform_0(%arg0: i32) -> (i32, i32, i32) {
    %c0_i32 = arith.constant 0 : i32
    %c0_i32_0 = arith.constant 0 : i32
    %c0_i32_1 = arith.constant 0 : i32
    return %arg0, %c0_i32, %c0_i32_0 : i32, i32, i32
  }
  func.func @transform_1(%arg0: i32) -> (i32, i32, i32) {
    %c0_i32 = arith.constant 0 : i32
    %c0_i32_0 = arith.constant 0 : i32
    %c0_i32_1 = arith.constant 0 : i32
    return %arg0, %c0_i32, %c0_i32_0 : i32, i32, i32
  }
  func.func @transform_2(%arg0: i32) -> (i32, i32) {
    %c0_i32 = arith.constant 0 : i32
    %c0_i32_0 = arith.constant 0 : i32
    %c0_i32_1 = arith.constant 0 : i32
    return %c0_i32, %c0_i32_0 : i32, i32
  }
  func.func @transform_3(%arg0: i32) -> (i32, i32) {
    %c0_i32 = arith.constant 0 : i32
    %c0_i32_0 = arith.constant 0 : i32
    %c0_i32_1 = arith.constant 0 : i32
    return %c0_i32, %c0_i32_0 : i32, i32
  }
  func.func @transform_4(%arg0: i32) -> (i32, i32) {
    %c0_i32 = arith.constant 0 : i32
    %c0_i32_0 = arith.constant 0 : i32
    %c0_i32_1 = arith.constant 0 : i32
    return %c0_i32, %c0_i32_0 : i32, i32
  }
  func.func @transform_5(%arg0: i32) -> (i32, i32) {
    %c0_i32 = arith.constant 0 : i32
    %c0_i32_0 = arith.constant 0 : i32
    %c0_i32_1 = arith.constant 0 : i32
    return %c0_i32, %c0_i32_0 : i32, i32
  }
  func.func @transform_6(%arg0: i32) -> (i32, i32, i32) {
    %c0_i32 = arith.constant 0 : i32
    %c0_i32_0 = arith.constant 0 : i32
    %c0_i32_1 = arith.constant 0 : i32
    %c0_i32_2 = arith.constant 0 : i32
    return %c0_i32, %c0_i32_0, %c0_i32_1 : i32, i32, i32
  }
  func.func @transform_7(%arg0: i32) -> (i32, i32) {
    %c0_i32 = arith.constant 0 : i32
    %c0_i32_0 = arith.constant 0 : i32
    %c0_i32_1 = arith.constant 0 : i32
    return %c0_i32, %c0_i32_0 : i32, i32
  }
  func.func @transform_8(%arg0: i32) -> (i32, i32, i32) {
    %c0_i32 = arith.constant 0 : i32
    %c0_i32_0 = arith.constant 0 : i32
    %c0_i32_1 = arith.constant 0 : i32
    return %arg0, %c0_i32, %c0_i32_0 : i32, i32, i32
  }
}

</mosaic_0001>

<bundles_post_ra>
// kernel: tpu_custom_call.1
= control target key start
LH: loop header
LB: loop body
LE: loop exit
PB: predicated region body
PF: predicated region fallthrough
CT: control target
= control target key end

     0   :  { %13 = vsyncpa [#allocation3], 0  ;;  %s1800_s0 = inlined_call_operand.hbm [shape: f32[2,8,128], index: 0, kind: input, shape index: {}]   ;;  %s1801_s1 = inlined_call_operand.hbm [shape: f32[2,16,128], index: 1, kind: input, shape index: {}]   ;;  %s1802_s2 = inlined_call_operand.hbm [shape: bf16[128,128], index: 2, kind: input, shape index: {}]   ;;  %s1803_s3 = inlined_call_operand.vmem [shape: f32[1,128], index: 3, kind: input, shape index: {}]   ;;  %s1804_s4 = inlined_call_operand.hbm [shape: bf16[128,256], index: 4, kind: input, shape index: {}]   ;;  %s1805_s5 = inlined_call_operand.vmem [shape: f32[1,256], index: 5, kind: input, shape index: {}]   ;;  %s1806_s6 = inlined_call_operand.hbm [shape: bf16[2,64,128], index: 6, kind: input, shape index: {}]   ;;  %s1807_s7 = inlined_call_operand.vmem [shape: f32[1,128], index: 7, kind: input, shape index: {}]   ;;  %s1808_s8 = inlined_call_operand.hbm [shape: f32[2,8,128], index: 8, kind: output, shape index: {}]  }
   0x1   :  { %14 = vsyncpa [#allocation6], 0 }
   0x2   :  { %15 = vsyncpa [#allocation9], 0 }
   0x3   :  { %16 = vsyncpa [#allocation4], 0  ;;  %s1576_s27 = smov [#allocation5]   ;;  %s1577_s29 = smov [#allocation8]  }
   0x4   :  { %s34_s28 = sshll.u32 %s1576_s27, 4  ;;  %s60_s30 = sshll.u32 %s1577_s29, 4  ;;  %s35_s28 = int_to_ptr.vmem [resolvable:$true] %s34_s28  ;;  %s61_s30 = int_to_ptr.vmem [resolvable:$true] %s60_s30 }
   0x5   :  { %s1456_s9 = scalar_lea.vmem %s35_s28, 512  ;;  %p1461_p1 = scmp.lt.s32.totalorder %s35_s28, %s35_s28 }
   0x6   :  { %p1457_p0 = scmp.ne.s32.totalorder %s35_s28, %s1456_s9  ;;  %p1462_p2 = scmp.lt.s32.totalorder %s1456_s9, %s1456_s9 }
   0x8   :  { %p1463_p3 = por %p1462_p2, %p1461_p1 }
   0xa   :  { %p1464_p4 = pnand %p1463_p3, %p1457_p0 }
   0xc   :  { %1467 = shalt.err (!%p1464_p4)
}
   0xd   :  { %s1578_s10 = smov 128   ;;  %s1579_s11 = smov 8  }
   0xe   :  { %40 = dma.hbm_to_vmem [thread:$0]  %s1801_s1, 512, %s35_s28, [#allocation6], %s1578_s10, %s1578_s10, %s1579_s11  }
   0xf   :  { %s1476_s14 = scalar_lea.vmem %s61_s30, 2048  ;;  %p1481_p6 = scmp.lt.s32.totalorder %s61_s30, %s61_s30 }
  0x10   :  { %p1477_p5 = scmp.ne.s32.totalorder %s61_s30, %s1476_s14  ;;  %p1482_p7 = scmp.lt.s32.totalorder %s1476_s14, %s1476_s14 }
  0x12   :  { %p1483_p8 = por %p1482_p7, %p1481_p6 }
  0x14   :  { %p1484_p9 = pnand %p1483_p8, %p1477_p5 }
  0x16   :  { %1487 = shalt.err (!%p1484_p9)
}
  0x17   :  { %66 = dma.hbm_to_vmem [thread:$0]  %s1804_s4, 2048, %s61_s30, [#allocation9], %s1578_s10, %s1578_s10, %s1579_s11  }
  0x18   :  { %s1580_s17 = smov [#allocation2]   ;;  %s1581_s19 = smov [#allocation7]  }
  0x19   :  { %s22_s18 = sshll.u32 %s1580_s17, 4  ;;  %s46_s20 = sshll.u32 %s1581_s19, 4  ;;  %s23_s18 = int_to_ptr.vmem [resolvable:$true] %s22_s18  ;;  %s47_s20 = int_to_ptr.vmem [resolvable:$true] %s46_s20 }
  0x1a   :  { %s1496_s1 = scalar_lea.vmem %s23_s18, 256  ;;  %p1501_p11 = scmp.lt.s32.totalorder %s23_s18, %s23_s18 }
  0x1b   :  { %p1497_p10 = scmp.ne.s32.totalorder %s23_s18, %s1496_s1  ;;  %p1502_p12 = scmp.lt.s32.totalorder %s1496_s1, %s1496_s1 }
  0x1d   :  { %p1503_p13 = por %p1502_p12, %p1501_p11 }
  0x1f   :  { %p1504_p0 = pnand %p1503_p13, %p1497_p10 }
  0x21   :  { %1507 = shalt.err (!%p1504_p0)
}
  0x22   :  { %28 = dma.hbm_to_vmem [thread:$0]  %s1800_s0, 256, %s23_s18, [#allocation3], %s1578_s10, %s1578_s10, %s1579_s11  }
  0x23   :  { %s1516_s4 = scalar_lea.vmem %s47_s20, 1024  ;;  %p1521_p2 = scmp.lt.s32.totalorder %s47_s20, %s47_s20 }
  0x24   :  { %p1517_p1 = scmp.ne.s32.totalorder %s47_s20, %s1516_s4  ;;  %p1522_p3 = scmp.lt.s32.totalorder %s1516_s4, %s1516_s4 }
  0x26   :  { %p1523_p4 = por %p1522_p3, %p1521_p2 }
  0x28   :  { %p1524_p5 = pnand %p1523_p4, %p1517_p1 }
  0x2a   :  { %1527 = shalt.err (!%p1524_p5)
}
  0x2b   :  { %s1582_s23 = smov 64   ;;  %s1583_s24 = smov 4  }
  0x2c   :  { %52 = dma.hbm_to_vmem [thread:$0]  %s1802_s2, 1024, %s47_s20, [#allocation6], %s1582_s23, %s1582_s23, %s1583_s24  }
  0x2d   :  { %s1584_s27 = smov [#allocation10]  }
  0x2e   :  { %s74_s28 = sshll.u32 %s1584_s27, 4  ;;  %s75_s28 = int_to_ptr.vmem [resolvable:$true] %s74_s28 }
  0x2f   :  { %s1536_s29 = scalar_lea.vmem %s75_s28, 1024  ;;  %p1541_p7 = scmp.lt.s32.totalorder %s75_s28, %s75_s28 }
  0x30   :  { %p1537_p6 = scmp.ne.s32.totalorder %s75_s28, %s1536_s29  ;;  %p1542_p8 = scmp.lt.s32.totalorder %s1536_s29, %s1536_s29 }
  0x32   :  { %p1543_p9 = por %p1542_p8, %p1541_p7 }
  0x34   :  { %p1544_p10 = pnand %p1543_p9, %p1537_p6 }
  0x36   :  { %1547 = shalt.err (!%p1544_p10)
}
  0x37   :  { %80 = dma.hbm_to_vmem [thread:$0]  %s1806_s6, 1024, %s75_s28, [#allocation9], %s1582_s23, %s1582_s23, %s1583_s24  }
  0x38   :  { %1568 = dma.done.wait [#allocation3], 256  }
  0x39   :  { %1569 = vsyncadd [#allocation3], 4294967040 }
  0x3a   :  { %1570 = dma.done.wait [#allocation6], 1536  }
  0x3b   :  { %1571 = vsyncadd [#allocation6], 4294965760 }
  0x3c   :  { %1572 = dma.done.wait [#allocation9], 3072  }
  0x3d   :  { %1573 = vsyncadd [#allocation9], 4294964224  ;;  %v1585_v0 = vmov 0.0   ;;  %v1586_v1 = vmov 0   ;;  %vm1587_vm0 = vmmov 0   ;;  %v1392_v7 = vld [vmem:[#allocation7 + $0x38] sm:$0xff]   ;;  %v238_v34 = vlaneseq }
  0x3e   :  { %1255 = vmatprep.subr.bf16.mxu0 %v1585_v0  ;;  %360 = vmatprep.mubr.bf16.mxu1 %v1586_v1  ;;  %v1384_v2 = vld [vmem:[#allocation8 + $0x74] ss:$8 sps:$4 sm:$0xff]   ;;  %v1386_v3 = vld [vmem:[#allocation8 + $0x70] ss:$8 sps:$4 sm:$0xff]   ;;  %v1387_v4 = vld [vmem:[#allocation8 + $0x64] ss:$8 sps:$4 sm:$0xff]  }
  0x3f   :  { %1271 = vmatprep.mubr.msk.bf16.mxu0 %vm1587_vm0, %v1585_v0  ;;  %328 = vmatprep.subr.bf16.mxu1 %v1384_v2  ;;  %v1389_v5 = vld [vmem:[#allocation8 + $0x60] ss:$8 sps:$4 sm:$0xff]   ;;  %v1390_v6 = vld [vmem:[#allocation8 + $0x54] ss:$8 sps:$4 sm:$0xff]   ;;  %v1393_v9 = vld [vmem:[#allocation8 + $0x50] ss:$8 sps:$4 sm:$0xff]  }
  0x40   :  { %329 = vmatpush1.bf16.msra.mxu1 %v1386_v3  ;;  %1256 = vmatpush3.bf16.msra.mxu0 %v1392_v7  ;;  %v1396_v8 = vld [vmem:[#allocation7 + $0x30] sm:$0xff]   ;;  %v1394_v10 = vld [vmem:[#allocation8 + $0x44] ss:$8 sps:$4 sm:$0xff]   ;;  %v1397_v12 = vld [vmem:[#allocation8 + $0x40] ss:$8 sps:$4 sm:$0xff]   ;;  %v239_v36 = vshrl.u32 %v238_v34, 7 }
  0x41   :  { %330 = vmatprep.subr.bf16.mxu1 %v1387_v4  ;;  %1257 = vmatprep.subr.bf16.mxu0 %v1585_v0  ;;  %v1400_v11 = vld [vmem:[#allocation7 + $0x28] sm:$0xff]   ;;  %v1398_v13 = vld [vmem:[#allocation8 + $0x34] ss:$8 sps:$4 sm:$0xff]   ;;  %v1404_v14 = vld [vmem:[#allocation7 + $0x20] sm:$0xff]   ;;  %vm386_vm1 = vcmask 523264   ;;  %vm433_vm2 = vcmask 130048  }
  0x42   :  { %v1401_v15 = vld [vmem:[#allocation8 + $0x30] ss:$8 sps:$4 sm:$0xff]   ;;  %v1402_v16 = vld [vmem:[#allocation8 + $0x24] ss:$8 sps:$4 sm:$0xff]   ;;  %v1405_v18 = vld [vmem:[#allocation8 + $0x20] ss:$8 sps:$4 sm:$0xff]  }
  0x43   :  { %v1408_v17 = vld [vmem:[#allocation7 + $0x18] sm:$0xff]   ;;  %v1412_v20 = vld [vmem:[#allocation7 + $0x10] sm:$0xff]   ;;  %v1410_v22 = vld [vmem:[#allocation8 + $0x4] ss:$8 sps:$4 sm:$0xff]   ;;  %v240_v37 = vsub.s32 0, %v239_v36  ;;  %v244_v48 = vsub.s32 1, %v239_v36 }
  0x44   :  { %331 = vmatpush1.bf16.msra.mxu1 %v1389_v5  ;;  %1258 = vmatpush3.bf16.msra.mxu0 %v1396_v8  ;;  %v1406_v19 = vld [vmem:[#allocation8 + $0x14] ss:$8 sps:$4 sm:$0xff]   ;;  %v1409_v21 = vld [vmem:[#allocation8 + $0x10] ss:$8 sps:$4 sm:$0xff]   ;;  %v1414_v23 = vld [vmem:[#allocation7 + $0x8] sm:$0xff]  }
  0x45   :  { %332 = vmatprep.subr.bf16.mxu1 %v1390_v6  ;;  %1259 = vmatprep.subr.bf16.mxu0 %v1585_v0  ;;  %v1413_v24 = vld [vmem:[#allocation8] ss:$8 sps:$4 sm:$0xff]   ;;  %v99_v28 = vld [vmem:[#allocation2] sm:$0xff]  ;;  %v100_v29 = vld [vmem:[#allocation2 + $0x8] sm:$0xff] }
  0x46   :  { %v102_v25 = vld [vmem:[#allocation5] sm:$0xff]  ;;  %v103_v26 = vld [vmem:[#allocation5 + $0x8] sm:$0xff]  ;;  %v101_v31 = vpack.c.bf16 %v100_v29, %v99_v28  ;;  %v104_v32 = vld [vmem:[#allocation5 + $0x10] sm:$0xff] }
  0x47   :  { %v1415_v27 = vld [vmem:[#allocation7] sm:$0xff]   ;;  %v106_v30 = vpack.c.bf16 %v103_v26, %v102_v25  ;;  %v105_v33 = vld [vmem:[#allocation5 + $0x18] sm:$0xff]  ;;  %v236_v38 = vld [vmem:[%s1805_s5] sm:$0x3] }
  0x48   :  { %333 = vmatpush1.bf16.msra.mxu1 %v1393_v9  ;;  %1260 = vmatpush3.bf16.msra.mxu0 %v1400_v11  ;;  %v107_v35 = vpack.c.bf16 %v105_v33, %v104_v32  ;;  %v241_v40 = vrot.slane %v236_v38, %v240_v37  ;;  %v1155_v42 = vld [vmem:[%s1803_s3] ss:$0 sm:$0xff]  ;;  %v1688_v56 = vrot.slane %v236_v38, %v244_v48  ;;  %v1420_v33 = vld [vmem:[#allocation10 + $0x38] sm:$0xff]   ;;  %v1423_v36 = vld [vmem:[#allocation10 + $0x20] sm:$0xff]  }
  0x49   :  { %334 = vmatprep.subr.bf16.mxu1 %v1394_v10  ;;  %1261 = vmatprep.subr.bf16.mxu0 %v1585_v0  ;;  %v1421_v34 = vld [vmem:[#allocation10 + $0x30] sm:$0xff]  }
  0x4c   :  { %335 = vmatpush1.bf16.msra.mxu1 %v1397_v12  ;;  %1262 = vmatpush3.bf16.msra.mxu0 %v1404_v14 }
  0x4d   :  { %336 = vmatprep.subr.bf16.mxu1 %v1398_v13  ;;  %1263 = vmatprep.subr.bf16.mxu0 %v1585_v0 }
  0x50   :  { %337 = vmatpush1.bf16.msra.mxu1 %v1401_v15  ;;  %1264 = vmatpush3.bf16.msra.mxu0 %v1408_v17 }
  0x51   :  { %338 = vmatprep.subr.bf16.mxu1 %v1402_v16  ;;  %1265 = vmatprep.subr.bf16.mxu0 %v1585_v0 }
  0x54   :  { %339 = vmatpush1.bf16.msra.mxu1 %v1405_v18  ;;  %1266 = vmatpush3.bf16.msra.mxu0 %v1412_v20 }
  0x55   :  { %340 = vmatprep.subr.bf16.mxu1 %v1406_v19  ;;  %1267 = vmatprep.subr.bf16.mxu0 %v1585_v0 }
  0x58   :  { %341 = vmatpush1.bf16.msra.mxu1 %v1409_v21  ;;  %1268 = vmatpush3.bf16.msra.mxu0 %v1414_v23 }
  0x59   :  { %342 = vmatprep.subr.bf16.mxu1 %v1410_v22  ;;  %1269 = vmatprep.subr.bf16.mxu0 %v1585_v0 }
  0x5c   :  { %343 = vmatpush1.bf16.msra.mxu1 %v1413_v24  ;;  %1270 = vmatpush3.bf16.msra.mxu0 %v1415_v27 }
  0x5d   :  { %1287 = vmatprep.subr.bf16.mxu1 %v1585_v0  ;;  %1275 = vmatprep.subr.bf16.mxu0 %v1585_v0 }
  0x5f   :  { %361 = vmatmul.mubr.bf16.vlgmr.msra.gmra.mxu1 %v106_v30  ;;  %1272 = vmatmul.mubr.bf16.vlgmr.msra.gmra.mxu0 %v101_v31 }
  0x60   :  { %370 = vmatprep.mubr.bf16.mxu1 %v1586_v1  ;;  %1277 = vmatprep.mubr.msk.bf16.mxu0 %vm1587_vm0, %v1585_v0 }
  0x67   :  { %371 = vmatmul.mubr.bf16.gmra.mxu1 %v107_v35  ;;  %v1422_v35 = vld [vmem:[#allocation10 + $0x28] sm:$0xff]  }
  0x68   :  { %1289 = vmatprep.mubr.msk.bf16.mxu1 %vm1587_vm0, %v1585_v0 }
 0x11f   :  { %v362_v39 = vpop.f32.mrf.mxu1  ;;  %v213_v43 = vpop.f32.mrf.mxu0 }
 0x120   :  { %v363_v45 = vadd.f32 %v362_v39, %v241_v40  ;;  %v214_v49 = vadd.f32 %v1155_v42, %v213_v43  ;;  %v1417_v43 = vld [vmem:[#allocation10 + $0x10] sm:$0xff]  }
 0x121   :  { %v364_v41 = vpop.f32.mrf.mxu1  ;;  %v1273_v47 = vpop.f32.mrf.mxu0 }
 0x122   :  { %v365_v59 = vadd.f32 %v364_v41, %v1688_v56  ;;  %v1416_v41 = vld [vmem:[#allocation10 + $0x18] sm:$0xff]  }
 0x123   :  { %v366_v44 = vpop.f32.mrf.mxu1  ;;  %v216_v51 = vpop.f32.mrf.mxu0 }
 0x124   :  { %v367_v46 = vadd.f32 %v366_v44, %v241_v40  ;;  %v217_v52 = vadd.f32 %v1155_v42, %v216_v51  ;;  %v1418_v44 = vld [vmem:[#allocation10 + $0x8] sm:$0xff]  }
 0x125   :  { %v368_v53 = vpop.f32.mrf.mxu1  ;;  %v1274_v55 = vpop.f32.mrf.mxu0 }
 0x126   :  { %v382_v50 = vpack.c.bf16 %v367_v46, %v363_v45  ;;  %v1690_v57 = vpack.c.bf16 %v217_v52, %v214_v49  ;;  %v369_v58 = vadd.f32 %v368_v53, %v1688_v56  ;;  %v1419_v45 = vld [vmem:[#allocation10] sm:$0xff]  }
 0x127   :  { %v372_v1 = vpop.f32.mrf.mxu1 }
 0x128   :  { %502 = vrot.lane.b32.xlu0 %v382_v50, %s1582_s23  ;;  %v391_v54 = vsel %vm386_vm1, %v382_v50, 0  ;;  %v383_v60 = vpack.c.bf16 %v369_v58, %v365_v59  ;;  %v373_v4 = vadd.f32 %v372_v1, %v241_v40  ;;  %v762_v29 = vrot.slane %v1690_v57, 4 }
 0x129   :  { %1276 = vmatpush3.bf16.xpose.msra.mxu0 %v391_v54  ;;  %v1707_v2 = vpop.f32.mrf.mxu1 }
 0x12a   :  { %1281 = vmatprep.subr.bf16.mxu0 %v1585_v0  ;;  %v375_v46 = vadd.f32 %v1707_v2, %v1688_v56 }
 0x12b   :  { %v376_v3 = vpop.f32.mrf.mxu1 }
 0x12c   :  { %499 = vrot.lane.b32.xlu0 %v1690_v57, %s1582_s23  ;;  %v377_v5 = vadd.f32 %v376_v3, %v241_v40 }
 0x12d   :  { %v1712_v12 = vpop.f32.mrf.mxu1 }
 0x12e   :  { %v1709_v6 = vpack.c.bf16 %v377_v5, %v373_v4  ;;  %v379_v47 = vadd.f32 %v1712_v12, %v1688_v56 }
 0x130   :  { %1278 = vmatmul.mubr.msk.bf16.vlgmr.msra.gmra.mxu0 %vm386_vm1, %v1690_v57  ;;  %v1743_v50 = vpack.c.bf16 %v379_v47, %v375_v46  ;;  %v767_v56 = vsel %vm386_vm1, %v1709_v6, 0  ;;  %v1769_v57 = vld [vmem:[%s1807_s7] ss:$0 sm:$0xff]  ;;  %v1430_v46 = vld [vmem:[#allocation10 + $0x28] sm:$0xff]   ;;  %v1431_v47 = vld [vmem:[#allocation10 + $0x20] sm:$0xff]   ;;  %s1588_s7 = smov [#allocation11]  }
 0x131   :  { %1282 = vmatpush3.bf16.msra.mxu0 %v383_v60  ;;  %1283 = vmatprep.mubr.msk.bf16.mxu0 %vm1587_vm0, %v1585_v0  ;;  %s1141_s13 = sshll.u32 %s1588_s7, 4  ;;  %s1142_s13 = int_to_ptr.vmem [resolvable:$true] %s1141_s13 }
 0x132   :  { %1293 = vmatprep.subr.bf16.mxu0 %v1585_v0  ;;  %s1548_s14 = scalar_lea.vmem %s1142_s13, 256  ;;  %p1553_p12 = scmp.lt.s32.totalorder %s1142_s13, %s1142_s13 }
 0x133   :  { %p1549_p11 = scmp.ne.s32.totalorder %s1142_s13, %s1548_s14  ;;  %p1554_p13 = scmp.lt.s32.totalorder %s1548_s14, %s1548_s14 }
 0x135   :  { %p1555_p0 = por %p1554_p13, %p1553_p12 }
 0x137   :  { %p1556_p1 = pnand %p1555_p0, %p1549_p11 }
 0x19a   :  { %v503_v61 = vpop.permute.xlu0 %502 }
 0x19b   :  { %v508_v62 = vsel %vm386_vm1, %v503_v61, 0 }
 0x19c   :  { %1288 = vmatpush3.bf16.xpose.msra.mxu1 %v508_v62 }
 0x19d   :  { %1299 = vmatprep.subr.bf16.mxu1 %v1585_v0 }
 0x19e   :  { %v500_v63 = vpop.permute.xlu0 %499 }
 0x1a3   :  { %1290 = vmatmul.mubr.msk.bf16.vlgmr.msra.gmra.mxu1 %vm386_vm1, %v500_v63 }
 0x1a4   :  { %1307 = vmatprep.mubr.msk.bf16.mxu1 %vm1587_vm0, %v1585_v0  ;;  %1300 = vmatpush3.bf16.msra.mxu1 %v1420_v33 }
 0x1a5   :  { %1301 = vmatprep.subr.bf16.mxu1 %v1585_v0 }
 0x1a8   :  { %1302 = vmatpush3.bf16.msra.mxu1 %v1421_v34 }
 0x1a9   :  { %1303 = vmatprep.subr.bf16.mxu1 %v1585_v0 }
 0x1ac   :  { %1304 = vmatpush3.bf16.msra.mxu1 %v1422_v35 }
 0x1ad   :  { %1305 = vmatprep.subr.bf16.mxu1 %v1585_v0 }
 0x1b0   :  { %1306 = vmatpush3.bf16.msra.mxu1 %v1423_v36 }
 0x1b1   :  { %1323 = vmatprep.subr.bf16.mxu1 %v1585_v0 }
 0x1f0   :  { %v427_v7 = vpop.f32.mrf.mxu0 }
 0x1f1   :  { %v434_v8 = vsel %vm433_vm2, %v427_v7, -inf }
 0x1f2   :  { %435 = vmax.xlane.f32.xlu1 %v434_v8  ;;  %v1279_v9 = vpop.f32.mrf.mxu0 }
 0x1f4   :  { %v430_v10 = vpop.f32.mrf.mxu0 }
 0x1f6   :  { %v1280_v11 = vpop.f32.mrf.mxu0 }
 0x263   :  { %v544_v13 = vpop.f32.mrf.mxu1 }
 0x264   :  { %v550_v14 = vsel %vm433_vm2, %v544_v13, -inf }
 0x265   :  { %v1291_v15 = vpop.f32.mrf.mxu1  ;;  %551 = vmax.xlane.f32.xlu1 %v550_v14 }
 0x267   :  { %v547_v16 = vpop.f32.mrf.mxu1 }
 0x269   :  { %v1292_v17 = vpop.f32.mrf.mxu1 }
 0x27b   :  { %v436_v18 = vpop.xlane.xlu1 %435 }
 0x27c   :  { %v437_v19 = vsub.f32 %v427_v7, %v436_v18 }
 0x27e   :  { %v438_v20 = vmul.f32 1.442695, %v437_v19 }
 0x280   :  { %1432 = vpow2.f32 %v438_v20 }
 0x28d   :  { %v1433_v21 = vpop.eup %1432 }
 0x28e   :  { %v440_v22 = vsel %vm433_vm2, %v1433_v21, 0.0 }
 0x28f   :  { %441 = vadd.xlane.f32.xlu0 %v440_v22 }
 0x2ee   :  { %v552_v23 = vpop.xlane.xlu1 %551 }
 0x2ef   :  { %v553_v24 = vsub.f32 %v544_v13, %v552_v23 }
 0x2f1   :  { %v554_v25 = vmul.f32 1.442695, %v553_v24 }
 0x2f3   :  { %1434 = vpow2.f32 %v554_v25 }
 0x300   :  { %v1435_v26 = vpop.eup %1434 }
 0x301   :  { %v556_v27 = vsel %vm433_vm2, %v1435_v26, 0.0 }
 0x302   :  { %557 = vadd.xlane.f32.xlu1 %v556_v27 }
 0x313   :  { %563 = vrot.lane.b32.xlu1 %v383_v60, %s1582_s23 }
 0x317   :  { %876 = vrot.lane.b32.xlu1 %v1709_v6, %s1582_s23 }
 0x318   :  { %v442_v28 = vpop.xlane.xlu0 %441 }
 0x319   :  { %1436 = vrcp.f32 %v442_v28 }
 0x31b   :  { %873 = vrot.lane.b32.xlu1 %v762_v29, %s1582_s23 }
 0x326   :  { %v1437_v30 = vpop.eup %1436 }
 0x327   :  { %v444_v31 = vmul.f32 %v1437_v30, %v1433_v21 }
 0x329   :  { %v445_v32 = vpack.c.bf16 %v444_v31, %v444_v31  ;;  %v1426_v31 = vld [vmem:[#allocation10 + $0x38] sm:$0xff]  }
 0x32b   :  { %1284 = vmatmul.mubr.msk.bf16.vlgmr.msra.gmra.mxu0 %vm433_vm2, %v445_v32 }
 0x32c   :  { %1295 = vmatprep.mubr.msk.bf16.mxu0 %vm1587_vm0, %v1585_v0 }
 0x38b   :  { %v558_v37 = vpop.xlane.xlu1 %557 }
 0x38c   :  { %1438 = vrcp.f32 %v558_v37 }
 0x38f   :  { %v564_v38 = vpop.permute.xlu1 %563 }
 0x390   :  { %1294 = vmatpush3.bf16.msra.mxu0 %v564_v38 }
 0x391   :  { %1311 = vmatprep.subr.bf16.mxu0 %v1585_v0 }
 0x393   :  { %v877_v61 = vpop.permute.xlu1 %876 }
 0x394   :  { %v882_v62 = vsel %vm386_vm1, %v877_v61, 0 }
 0x397   :  { %v874_v63 = vpop.permute.xlu1 %873 }
 0x399   :  { %v1439_v39 = vpop.eup %1438 }
 0x39a   :  { %v560_v40 = vmul.f32 %v1439_v39, %v1435_v26 }
 0x39c   :  { %v561_v42 = vpack.c.bf16 %v560_v40, %v560_v40  ;;  %v1424_v40 = vld [vmem:[#allocation10 + $0x18] sm:$0xff]  }
 0x39e   :  { %1296 = vmatmul.mubr.msk.bf16.vlgmr.msra.gmra.mxu0 %vm433_vm2, %v561_v42  ;;  %v1425_v42 = vld [vmem:[#allocation10 + $0x10] sm:$0xff]  }
 0x39f   :  { %1312 = vmatpush3.bf16.msra.mxu0 %v1416_v41  ;;  %1319 = vmatprep.mubr.msk.bf16.mxu0 %vm1587_vm0, %v1585_v0 }
 0x3a0   :  { %1313 = vmatprep.subr.bf16.mxu0 %v1585_v0 }
 0x3a3   :  { %1314 = vmatpush3.bf16.msra.mxu0 %v1417_v43  ;;  %v1427_v43 = vld [vmem:[#allocation10 + $0x8] sm:$0xff]  }
 0x3a4   :  { %1315 = vmatprep.subr.bf16.mxu0 %v1585_v0 }
 0x3a7   :  { %1316 = vmatpush3.bf16.msra.mxu0 %v1418_v44  ;;  %v1428_v44 = vld [vmem:[#allocation10 + $0x30] sm:$0xff]  }
 0x3a8   :  { %1317 = vmatprep.subr.bf16.mxu0 %v1585_v0 }
 0x3ab   :  { %1318 = vmatpush3.bf16.msra.mxu0 %v1419_v45  ;;  %v1429_v45 = vld [vmem:[#allocation10] sm:$0xff]  }
 0x3ac   :  { %1329 = vmatprep.subr.bf16.mxu0 %v1585_v0 }
 0x3eb   :  { %v483_v48 = vpop.f32.mrf.mxu0 }
 0x3ec   :  { %v489_v49 = vpack.c.bf16 %v483_v48, %v483_v48 }
 0x3ed   :  { %v1285_v51 = vpop.f32.mrf.mxu0 }
 0x3ee   :  { %1320 = vmatmul.mubr.msk.bf16.vlgmr.msra.gmra.mxu0 %vm386_vm1, %v489_v49 }
 0x3ef   :  { %1330 = vmatpush3.bf16.msra.mxu0 %v1743_v50  ;;  %v486_v52 = vpop.f32.mrf.mxu0  ;;  %1331 = vmatprep.mubr.msk.bf16.mxu0 %vm1587_vm0, %v1585_v0 }
 0x3f0   :  { %1341 = vmatprep.subr.bf16.mxu0 %v1585_v0 }
 0x3f1   :  { %v1286_v53 = vpop.f32.mrf.mxu0 }
 0x45e   :  { %v603_v54 = vpop.f32.mrf.mxu0 }
 0x45f   :  { %v609_v55 = vpack.c.bf16 %v603_v54, %v603_v54 }
 0x460   :  { %v1297_v58 = vpop.f32.mrf.mxu0 }
 0x461   :  { %1308 = vmatmul.mubr.msk.bf16.vlgmr.msra.gmra.mxu1 %vm386_vm1, %v609_v55 }
 0x462   :  { %1324 = vmatpush3.bf16.xpose.msra.mxu1 %v767_v56  ;;  %v606_v59 = vpop.f32.mrf.mxu0  ;;  %1325 = vmatprep.mubr.msk.bf16.mxu1 %vm1587_vm0, %v1585_v0 }
 0x463   :  { %1335 = vmatprep.subr.bf16.mxu1 %v1585_v0 }
 0x464   :  { %v1298_v60 = vpop.f32.mrf.mxu0 }
 0x469   :  { %1326 = vmatmul.mubr.msk.bf16.vlgmr.msra.gmra.mxu1 %vm386_vm1, %v762_v29 }
 0x46a   :  { %1336 = vmatpush3.bf16.xpose.msra.mxu1 %v882_v62  ;;  %1337 = vmatprep.mubr.msk.bf16.mxu1 %vm1587_vm0, %v1585_v0 }
 0x46b   :  { %1347 = vmatprep.subr.bf16.mxu1 %v1585_v0 }
 0x471   :  { %1338 = vmatmul.mubr.msk.bf16.vlgmr.msra.gmra.mxu1 %vm386_vm1, %v874_v63 }
 0x472   :  { %1355 = vmatprep.mubr.msk.bf16.mxu1 %vm1587_vm0, %v1585_v0  ;;  %1348 = vmatpush3.bf16.msra.mxu1 %v1426_v31 }
 0x473   :  { %1349 = vmatprep.subr.bf16.mxu1 %v1585_v0 }
 0x476   :  { %1350 = vmatpush3.bf16.msra.mxu1 %v1428_v44 }
 0x477   :  { %1351 = vmatprep.subr.bf16.mxu1 %v1585_v0 }
 0x47a   :  { %1352 = vmatpush3.bf16.msra.mxu1 %v1430_v46 }
 0x47b   :  { %1353 = vmatprep.subr.bf16.mxu1 %v1585_v0 }
 0x47e   :  { %1354 = vmatpush3.bf16.msra.mxu1 %v1431_v47 }
 0x4ae   :  { %v747_v1 = vpop.f32.mrf.mxu0 }
 0x4b0   :  { %v1321_v2 = vpop.f32.mrf.mxu0 }
 0x4b2   :  { %v750_v3 = vpop.f32.mrf.mxu0 }
 0x4b4   :  { %v1322_v4 = vpop.f32.mrf.mxu0 }
 0x521   :  { %v680_v5 = vpop.f32.mrf.mxu1 }
 0x522   :  { %v748_v6 = vadd.f32 %v747_v1, %v680_v5 }
 0x523   :  { %v1309_v7 = vpop.f32.mrf.mxu1 }
 0x524   :  { %v760_v8 = vadd.f32 %v1769_v57, %v748_v6 }
 0x525   :  { %v683_v9 = vpop.f32.mrf.mxu1 }
 0x526   :  { %761 = vst [vmem:[#allocation11] sm:$0xff] %v760_v8 }
 0x527   :  { %v1310_v10 = vpop.f32.mrf.mxu1 }
 0x529   :  { %v803_v11 = vpop.f32.mrf.mxu1 }
 0x52a   :  { %v809_v12 = vsel %vm433_vm2, %v803_v11, -inf }
 0x52b   :  { %810 = vmax.xlane.f32.xlu1 %v809_v12  ;;  %v1327_v13 = vpop.f32.mrf.mxu1 }
 0x52d   :  { %v806_v14 = vpop.f32.mrf.mxu1 }
 0x52f   :  { %v1328_v15 = vpop.f32.mrf.mxu1 }
 0x531   :  { %v918_v16 = vpop.f32.mrf.mxu1 }
 0x532   :  { %v924_v17 = vsel %vm433_vm2, %v918_v16, -inf }
 0x533   :  { %925 = vmax.xlane.f32.xlu0 %v924_v17  ;;  %v1339_v18 = vpop.f32.mrf.mxu1 }
 0x535   :  { %v921_v19 = vpop.f32.mrf.mxu1 }
 0x537   :  { %v1340_v20 = vpop.f32.mrf.mxu1 }
 0x5b4   :  { %v811_v21 = vpop.xlane.xlu1 %810 }
 0x5b5   :  { %v812_v22 = vsub.f32 %v803_v11, %v811_v21 }
 0x5b7   :  { %v813_v23 = vmul.f32 1.442695, %v812_v22 }
 0x5b9   :  { %1440 = vpow2.f32 %v813_v23 }
 0x5bc   :  { %v926_v24 = vpop.xlane.xlu0 %925 }
 0x5bd   :  { %v927_v25 = vsub.f32 %v918_v16, %v926_v24 }
 0x5bf   :  { %v928_v26 = vmul.f32 1.442695, %v927_v25 }
 0x5c1   :  { %1442 = vpow2.f32 %v928_v26 }
 0x5c6   :  { %v1441_v27 = vpop.eup %1440 }
 0x5c7   :  { %v815_v28 = vsel %vm433_vm2, %v1441_v27, 0.0 }
 0x5c8   :  { %816 = vadd.xlane.f32.xlu0 %v815_v28 }
 0x5ce   :  { %v1443_v29 = vpop.eup %1442 }
 0x5cf   :  { %v930_v30 = vsel %vm433_vm2, %v1443_v29, 0.0 }
 0x5d0   :  { %931 = vadd.xlane.f32.xlu0 %v930_v30 }
 0x5e6   :  { %937 = vrot.lane.b32.xlu0 %v1743_v50, %s1582_s23 }
 0x651   :  { %v817_v32 = vpop.xlane.xlu0 %816 }
 0x652   :  { %1444 = vrcp.f32 %v817_v32 }
 0x659   :  { %v932_v33 = vpop.xlane.xlu0 %931 }
 0x65a   :  { %1446 = vrcp.f32 %v932_v33 }
 0x65d   :  { %v938_v37 = vpop.permute.xlu0 %937 }
 0x65f   :  { %v1445_v34 = vpop.eup %1444 }
 0x660   :  { %v819_v35 = vmul.f32 %v1445_v34, %v1441_v27 }
 0x662   :  { %v820_v36 = vpack.c.bf16 %v819_v35, %v819_v35 }
 0x664   :  { %1332 = vmatmul.mubr.msk.bf16.vlgmr.msra.gmra.mxu0 %vm433_vm2, %v820_v36 }
 0x665   :  { %1342 = vmatpush3.bf16.msra.mxu0 %v938_v37  ;;  %1343 = vmatprep.mubr.msk.bf16.mxu0 %vm1587_vm0, %v1585_v0 }
 0x666   :  { %1359 = vmatprep.subr.bf16.mxu0 %v1585_v0 }
 0x667   :  { %v1447_v38 = vpop.eup %1446 }
 0x668   :  { %v934_v39 = vmul.f32 %v1447_v38, %v1443_v29 }
 0x66a   :  { %v935_v41 = vpack.c.bf16 %v934_v39, %v934_v39 }
 0x66c   :  { %1344 = vmatmul.mubr.msk.bf16.vlgmr.msra.gmra.mxu0 %vm433_vm2, %v935_v41 }
 0x66d   :  { %1360 = vmatpush3.bf16.msra.mxu0 %v1424_v40  ;;  %1367 = vmatprep.mubr.msk.bf16.mxu0 %vm1587_vm0, %v1585_v0 }
 0x66e   :  { %1361 = vmatprep.subr.bf16.mxu0 %v1585_v0 }
 0x671   :  { %1362 = vmatpush3.bf16.msra.mxu0 %v1425_v42 }
 0x672   :  { %1363 = vmatprep.subr.bf16.mxu0 %v1585_v0 }
 0x675   :  { %1364 = vmatpush3.bf16.msra.mxu0 %v1427_v43 }
 0x676   :  { %1365 = vmatprep.subr.bf16.mxu0 %v1585_v0 }
 0x679   :  { %1366 = vmatpush3.bf16.msra.mxu0 %v1429_v45 }
 0x724   :  { %v858_v48 = vpop.f32.mrf.mxu0 }
 0x725   :  { %v864_v49 = vpack.c.bf16 %v858_v48, %v858_v48 }
 0x726   :  { %v1333_v50 = vpop.f32.mrf.mxu0 }
 0x727   :  { %1368 = vmatmul.mubr.msk.bf16.vlgmr.msra.gmra.mxu0 %vm386_vm1, %v864_v49 }
 0x728   :  { %v861_v51 = vpop.f32.mrf.mxu0 }
 0x72a   :  { %v1334_v52 = vpop.f32.mrf.mxu0 }
 0x72c   :  { %v977_v53 = vpop.f32.mrf.mxu0 }
 0x72d   :  { %v983_v54 = vpack.c.bf16 %v977_v53, %v977_v53 }
 0x72e   :  { %v1345_v55 = vpop.f32.mrf.mxu0 }
 0x72f   :  { %1356 = vmatmul.mubr.msk.bf16.vlgmr.msra.gmra.mxu1 %vm386_vm1, %v983_v54 }
 0x730   :  { %v980_v58 = vpop.f32.mrf.mxu0 }
 0x732   :  { %v1346_v56 = vpop.f32.mrf.mxu0 }
 0x7e7   :  { %v1120_v59 = vpop.f32.mrf.mxu0 }
 0x7e9   :  { %v1369_v60 = vpop.f32.mrf.mxu0 }
 0x7eb   :  { %v1123_v61 = vpop.f32.mrf.mxu0 }
 0x7ed   :  { %v1370_v0 = vpop.f32.mrf.mxu0 }
 0x7ef   :  { %v1053_v62 = vpop.f32.mrf.mxu1 }
 0x7f0   :  { %v1121_v63 = vadd.f32 %v1120_v59, %v1053_v62 }
 0x7f1   :  { %v1357_v1 = vpop.f32.mrf.mxu1 }
 0x7f2   :  { %v1133_v2 = vadd.f32 %v1769_v57, %v1121_v63 }
 0x7f3   :  { %v1056_v3 = vpop.f32.mrf.mxu1 }
 0x7f4   :  { %1135 = vst [vmem:[#allocation11 + $0x8] sm:$0xff] %v1133_v2 }
 0x7f5   :  { %v1358_v4 = vpop.f32.mrf.mxu1 }
 0x7f6   :  { %1559 = shalt.err (!%p1556_p1)
}
 0x7f7   :  { %1147 = dma.vmem_to_hbm [thread:$0]  %s1142_s13, 256, %s1808_s8, [#allocation4], %s1578_s10, %s1578_s10, %s1579_s11  }
 0x7f8   :  { %1574 = dma.done.wait [#allocation4], 256  }
 0x7f9   :  { %1575 = vsyncadd [#allocation4], 4294967040 }
 0x7fa   :  { %1151 = vsyncpa [#allocation3], 1 }
 0x7fb   :  { %1152 = vsyncpa [#allocation6], 1 }
 0x7fc   :  { %1153 = vsyncpa [#allocation9], 1 }
 0x7fd   :  { %1154 = vsyncpa [#allocation4], 1 }

</bundles_post_ra>
